<compile_context>
chip_gen: v7x
topology: tpu7x:2x2x1
jax: 0.10.0
libtpu: 0.0.40
codegen_flags: <defaults>
</compile_context>

<pallas_src>
import math
from functools import partial

import numpy as np
import jax
import jax.numpy as jnp
from jax.experimental import pallas as pl
from jax.experimental.pallas import tpu as pltpu

LN_EPS = 1e-5


# ------------------------------ kernel helpers --------------------------------

def _layernorm(y, g, b):
    mu = jnp.mean(y, axis=-1, keepdims=True)
    var = jnp.mean((y - mu) ** 2, axis=-1, keepdims=True)
    return (y - mu) * jax.lax.rsqrt(var + LN_EPS) * g + b


# --------------------------- encoder-layers kernel -----------------------------
# grid = (B, L): batch "parallel" (megacore split on v7x), layers "arbitrary"
# (sequential carry through the x_vmem scratch).

def _encoder_layers_kernel(x0_ref, wqkv_ref, bqkv_ref, wo_ref, bo_ref,
                           ln1g_ref, ln1b_ref,
                           w1_ref, b1_ref, w2_ref, b2_ref,
                           ln2g_ref, ln2b_ref,
                           o_ref,
                           x_vmem, attn_vmem,
                           *, d_model, nhead):
    D = d_model
    hd = D // nhead
    scale = jnp.float32(1.0 / math.sqrt(hd))
    l = pl.program_id(1)

    # Layer 0: load the embed+PE slab for this batch into the carried scratch.
    @pl.when(l == 0)
    def _():
        x_vmem[...] = x0_ref[0]

    x = x_vmem[...]                                               # (S, D)

    # ---- self attention: fused QKV matmul on the whole (S, D) slab ----
    qkv = jnp.dot(x, wqkv_ref[0], preferred_element_type=jnp.float32) + bqkv_ref[0]
    q, k, v = qkv[:, :D], qkv[:, D:2 * D], qkv[:, 2 * D:]

    for h in range(nhead):                                        # short static unroll
        c0 = h * hd
        qh = q[:, c0:c0 + hd]
        kh = k[:, c0:c0 + hd]
        vh = v[:, c0:c0 + hd]
        s = jnp.einsum('qd,kd->qk', qh, kh,
                       preferred_element_type=jnp.float32) * scale          # (S, S)
        s = s - jnp.max(s, axis=-1, keepdims=True)
        p = jnp.exp(s)
        p = p * pl.reciprocal(jnp.sum(p, axis=-1, keepdims=True), approx=True)
        # write this head's output into its lane range of the attention slab
        attn_vmem[:, c0:c0 + hd] = jnp.dot(p, vh, preferred_element_type=jnp.float32)

    # head concat == the slab itself; ONE full-K output projection matmul
    attn = jnp.dot(attn_vmem[...], wo_ref[0],
                   preferred_element_type=jnp.float32) + bo_ref[0]
    x = _layernorm(x + attn, ln1g_ref[0], ln1b_ref[0])

    # ---- feed forward ----
    h1 = jnp.dot(x, w1_ref[0], preferred_element_type=jnp.float32) + b1_ref[0]
    h1 = jnp.maximum(h1, 0.0)                                     # ReLU
    y = jnp.dot(h1, w2_ref[0], preferred_element_type=jnp.float32) + b2_ref[0]
    x = _layernorm(x + y, ln2g_ref[0], ln2b_ref[0])

    x_vmem[...] = x                                               # carry to next layer

    @pl.when(l == pl.num_programs(1) - 1)
    def _():
        o_ref[0] = x


# ------------------------------ vocab projection -------------------------------
# Separate pallas_call so wout is never resident alongside layer weights; tiled
# over V ("parallel") with lane-dense output tiles when V allows it.

def _vocab_proj_kernel(x_ref, w_ref, b_ref, o_ref):
    o_ref[...] = (jnp.dot(x_ref[...], w_ref[...], preferred_element_type=jnp.float32)
                  + b_ref[...])


def _pick_vocab_tile(v):
    for t in (1024, 512, 256, 128):
        if v % t == 0:
            return t
    return v  # small / unaligned vocab: single block


# ------------------------------- model glue -----------------------------------

def sinusoidal_pe(max_len, d_model):
    position = jnp.arange(max_len, dtype=jnp.float32)[:, None]
    div_term = jnp.exp(jnp.arange(0, d_model, 2, dtype=jnp.float32)
                       * (-math.log(10000.0) / d_model))
    pe = jnp.zeros((max_len, d_model), dtype=jnp.float32)
    pe = pe.at[:, 0::2].set(jnp.sin(position * div_term))
    pe = pe.at[:, 1::2].set(jnp.cos(position * div_term))
    return pe


def init_params(key, vocab_size, d_model, nhead, num_layers, dim_ff, max_len=64):
    keys = jax.random.split(key, 2 + num_layers)
    scale = 0.05
    params = {
        "embedding": jax.random.normal(keys[0], (vocab_size, d_model), jnp.float32),
        "pe": sinusoidal_pe(max_len, d_model),
        "layers": [],
    }
    for l in range(num_layers):
        lk = jax.random.split(keys[1 + l], 4)
        params["layers"].append({
            "wqkv": scale * jax.random.normal(lk[0], (3 * d_model, d_model), jnp.float32),
            "bqkv": jnp.zeros((3 * d_model,), jnp.float32),
            "wo": scale * jax.random.normal(lk[1], (d_model, d_model), jnp.float32),
            "bo": jnp.zeros((d_model,), jnp.float32),
            "ln1_g": jnp.ones((d_model,), jnp.float32),
            "ln1_b": jnp.zeros((d_model,), jnp.float32),
            "w1": scale * jax.random.normal(lk[2], (dim_ff, d_model), jnp.float32),
            "b1": jnp.zeros((dim_ff,), jnp.float32),
            "w2": scale * jax.random.normal(lk[3], (d_model, dim_ff), jnp.float32),
            "b2": jnp.zeros((d_model,), jnp.float32),
            "ln2_g": jnp.ones((d_model,), jnp.float32),
            "ln2_b": jnp.zeros((d_model,), jnp.float32),
        })
    kout = jax.random.split(keys[-1], 1)[0]
    params["wout"] = scale * jax.random.normal(kout, (vocab_size, d_model), jnp.float32)
    params["bout"] = jnp.zeros((vocab_size,), jnp.float32)
    return params


_STACKED_KEYS = ("wqkv_t", "bqkv", "wo_t", "bo", "ln1_g", "ln1_b",
                 "w1_t", "b1", "w2_t", "b2", "ln2_g", "ln2_b")


def prepare_pallas_params(params):
    """One-time: stack per-layer weights (leading layer axis) and pre-transpose so
    kernels compute x @ W_t.  Kept f32 to match the fp32 PyTorch reference; for
    production, cast the stacked weights to bf16 here."""
    layers = params["layers"]
    stk = lambda k: jnp.stack([lyr[k] for lyr in layers])
    return {
        "embedding": params["embedding"],
        "pe": params["pe"],
        "wqkv_t": jnp.stack([lyr["wqkv"].T for lyr in layers]),     # (L, D, 3D)
        "bqkv":   stk("bqkv")[:, None, :],                          # (L, 1, 3D)
        "wo_t":   jnp.stack([lyr["wo"].T for lyr in layers]),       # (L, D, D)
        "bo":     stk("bo")[:, None, :],                            # (L, 1, D)
        "ln1_g":  stk("ln1_g")[:, None, :],
        "ln1_b":  stk("ln1_b")[:, None, :],
        "w1_t":   jnp.stack([lyr["w1"].T for lyr in layers]),       # (L, D, FF)
        "b1":     stk("b1")[:, None, :],                            # (L, 1, FF)
        "w2_t":   jnp.stack([lyr["w2"].T for lyr in layers]),       # (L, FF, D)
        "b2":     stk("b2")[:, None, :],                            # (L, 1, D)
        "ln2_g":  stk("ln2_g")[:, None, :],
        "ln2_b":  stk("ln2_b")[:, None, :],
        "wout_t": params["wout"].T,                                 # (D, V)
        "bout":   params["bout"][None, :],                          # (1, V)
        "num_layers": len(layers),
    }


def _stacked_layer_spec(arr):
    """Block = one layer slice; index_map selects layer l of grid (b, l)."""
    ndim = arr.ndim
    block = (1,) + tuple(arr.shape[1:])
    index_map = lambda b, l, _nd=ndim: (l,) + (0,) * (_nd - 1)
    return pl.BlockSpec(block, index_map)


def foundational_transformer_pallas(pp, src, *, d_model, nhead):
    B, S = src.shape
    D = d_model
    L = pp["num_layers"]
    V = pp["wout_t"].shape[1]
    BS = B * S
    f32 = 4

    # XLA glue: embedding gather fused with *sqrt(D) and PE add (no BxSxD PE tile,
    # one fewer kernel input / DMA).
    x0 = (jnp.take(pp["embedding"], src, axis=0) * jnp.float32(math.sqrt(D))
          + pp["pe"][:S][None, :, :])                               # (B, S, D)

    stacked = [pp[k] for k in _STACKED_KEYS]

    # ---- encoder layers: grid=(B, L), per-layer weight streaming ----
    per_layer_bytes = sum(int(np.prod(a.shape[1:])) for a in stacked) * f32
    act_bytes = 4 * S * D * f32                      # x0 block, out block, 2 scratches
    enc_vmem = int(min(2 * (per_layer_bytes + act_bytes) + (4 << 20), 64 << 20))

    enc = pl.pallas_call(
        partial(_encoder_layers_kernel, d_model=D, nhead=nhead),
        out_shape=jax.ShapeDtypeStruct((B, S, D), jnp.float32),
        grid=(B, L),
        in_specs=[pl.BlockSpec((1, S, D), lambda b, l: (b, 0, 0))]
                 + [_stacked_layer_spec(a) for a in stacked],
        out_specs=pl.BlockSpec((1, S, D), lambda b, l: (b, 0, 0)),
        scratch_shapes=[pltpu.VMEM((S, D), jnp.float32),    # carried activation slab
                        pltpu.VMEM((S, D), jnp.float32)],   # attention head slab
        compiler_params=pltpu.CompilerParams(
            dimension_semantics=("parallel", "arbitrary"),
            vmem_limit_bytes=enc_vmem),
    )(x0, *stacked)

    # ---- vocab projection: separate call, tiled over V ----
    tv = _pick_vocab_tile(V)
    nv = V // tv
    voc_vmem = int(min(2 * (BS * D + D * tv + tv + BS * tv) * f32 + (4 << 20), 64 << 20))

    h = enc.reshape(BS, D)
    logits = pl.pallas_call(
        _vocab_proj_kernel,
        out_shape=jax.ShapeDtypeStruct((BS, V), jnp.float32),
        grid=(nv,),
        in_specs=[pl.BlockSpec((BS, D), lambda j: (0, 0)),
                  pl.BlockSpec((D, tv), lambda j: (0, j)),
                  pl.BlockSpec((1, tv), lambda j: (0, j))],
        out_specs=pl.BlockSpec((BS, tv), lambda j: (0, j)),
        compiler_params=pltpu.CompilerParams(
            dimension_semantics=("parallel",),
            vmem_limit_bytes=voc_vmem),
    )(h, pp["wout_t"], pp["bout"])
    return logits.reshape(B, S, V)


# --------------------------- pure-JAX reference --------------------------------

def _layernorm_ref(y, g, b):
    mu = jnp.mean(y, axis=-1, keepdims=True)
    var = jnp.mean((y - mu) ** 2, axis=-1, keepdims=True)
    return (y - mu) / jnp.sqrt(var + LN_EPS) * g + b


def foundational_transformer_ref(params, src, *, d_model, nhead):
    B, S = src.shape
    x = jnp.take(params["embedding"], src, axis=0) * math.sqrt(d_model) + params["pe"][:S]
    hd = d_model // nhead
    for layer in params["layers"]:
        qkv = x @ layer["wqkv"].T + layer["bqkv"]
        q, k, v = jnp.split(qkv, 3, axis=-1)
        q = q.reshape(B, S, nhead, hd).transpose(0, 2, 1, 3)
        k = k.reshape(B, S, nhead, hd).transpose(0, 2, 1, 3)
        v = v.reshape(B, S, nhead, hd).transpose(0, 2, 1, 3)
        s = jnp.einsum("bhqd,bhkd->bhqk", q, k) / math.sqrt(hd)
        p = jax.nn.softmax(s, axis=-1)
        a = jnp.einsum("bhqk,bhkd->bhqd", p, v).transpose(0, 2, 1, 3).reshape(B, S, d_model)
        a = a @ layer["wo"].T + layer["bo"]
        x = _layernorm_ref(x + a, layer["ln1_g"], layer["ln1_b"])
        h = jax.nn.relu(x @ layer["w1"].T + layer["b1"]) @ layer["w2"].T + layer["b2"]
        x = _layernorm_ref(x + h, layer["ln2_g"], layer["ln2_b"])
    return x @ params["wout"].T + params["bout"]


# ----------------------------------- main --------------------------------------

if __name__ == "__main__":
    vocab_size, d_model, nhead, num_layers, dim_ff = 32, 32, 4, 2, 64
    B, S = 2, 8

    key = jax.random.PRNGKey(0)
    pkey, dkey = jax.random.split(key)
    params = init_params(pkey, vocab_size, d_model, nhead, num_layers, dim_ff)
    src = jax.random.randint(dkey, (B, S), 0, vocab_size, dtype=jnp.int32)

    pp = prepare_pallas_params(params)               # one-time stack / transpose

    logits = foundational_transformer_pallas(pp, src, d_model=d_model, nhead=nhead)
    logits = jax.block_until_ready(logits)

    ref = jax.block_until_ready(
        foundational_transformer_ref(params, src, d_model=d_model, nhead=nhead))

    assert logits.shape == (B, S, vocab_size)
    np.testing.assert_allclose(np.asarray(logits), np.asarray(ref), rtol=2e-2, atol=2e-2)
    print("KERNEL_OK")
</pallas_src>

<mosaic_0001>
module attributes {stable_mosaic.version = 11 : i64} {
  func.func @_encoder_layers_kernel(%arg0: i32, %arg1: i32, %arg2: memref<1x8x32xf32, #tpu.memory_space<vmem>>, %arg3: memref<1x32x96xf32, #tpu.memory_space<vmem>>, %arg4: memref<1x1x96xf32, #tpu.memory_space<vmem>>, %arg5: memref<1x32x32xf32, #tpu.memory_space<vmem>>, %arg6: memref<1x1x32xf32, #tpu.memory_space<vmem>>, %arg7: memref<1x1x32xf32, #tpu.memory_space<vmem>>, %arg8: memref<1x1x32xf32, #tpu.memory_space<vmem>>, %arg9: memref<1x32x64xf32, #tpu.memory_space<vmem>>, %arg10: memref<1x1x64xf32, #tpu.memory_space<vmem>>, %arg11: memref<1x64x32xf32, #tpu.memory_space<vmem>>, %arg12: memref<1x1x32xf32, #tpu.memory_space<vmem>>, %arg13: memref<1x1x32xf32, #tpu.memory_space<vmem>>, %arg14: memref<1x1x32xf32, #tpu.memory_space<vmem>>, %arg15: memref<1x8x32xf32, #tpu.memory_space<vmem>>, %arg16: memref<8x32xf32, #tpu.memory_space<vmem>>, %arg17: memref<8x32xf32, #tpu.memory_space<vmem>>) attributes {dimension_semantics = [#tpu.dimension_semantics<parallel>, #tpu.dimension_semantics<arbitrary>], iteration_bounds = array<i64: 2, 2>, scalar_prefetch = 0 : i64, scratch_operands = 2 : i64, tpu.core_type = #tpu.core_type<tc>, window_params = [{transform_indices = @transform_0, window_bounds = array<i64: 1, 8, 32>}, {transform_indices = @transform_1, window_bounds = array<i64: 1, 32, 96>}, {transform_indices = @transform_2, window_bounds = array<i64: 1, 1, 96>}, {transform_indices = @transform_3, window_bounds = array<i64: 1, 32, 32>}, {transform_indices = @transform_4, window_bounds = array<i64: 1, 1, 32>}, {transform_indices = @transform_5, window_bounds = array<i64: 1, 1, 32>}, {transform_indices = @transform_6, window_bounds = array<i64: 1, 1, 32>}, {transform_indices = @transform_7, window_bounds = array<i64: 1, 32, 64>}, {transform_indices = @transform_8, window_bounds = array<i64: 1, 1, 64>}, {transform_indices = @transform_9, window_bounds = array<i64: 1, 64, 32>}, {transform_indices = @transform_10, window_bounds = array<i64: 1, 1, 32>}, {transform_indices = @transform_11, window_bounds = array<i64: 1, 1, 32>}, {transform_indices = @transform_12, window_bounds = array<i64: 1, 1, 32>}, {transform_indices = @transform_13, window_bounds = array<i64: 1, 8, 32>}]} {
    %c0_i32 = arith.constant 0 : i32
    %0 = arith.cmpi eq, %arg1, %c0_i32 : i32
    %1 = arith.extui %0 : i1 to i32
    %c0_i32_0 = arith.constant 0 : i32
    %2 = arith.cmpi ne, %1, %c0_i32_0 : i32
    scf.if %2 {
      %c0_82 = arith.constant 0 : index
      %c0_83 = arith.constant 0 : index
      %c0_84 = arith.constant 0 : index
      %168 = vector.load %arg2[%c0_82, %c0_83, %c0_84] : memref<1x8x32xf32, #tpu.memory_space<vmem>>, vector<1x8x32xf32>
      %169 = vector.shape_cast %168 : vector<1x8x32xf32> to vector<8x32xf32>
      %c0_85 = arith.constant 0 : index
      %c0_86 = arith.constant 0 : index
      %170 = vector.load %arg16[%c0_85, %c0_86] : memref<8x32xf32, #tpu.memory_space<vmem>>, vector<8x32xf32>
      tpu.vector_store %arg16[%c0_85, %c0_86], %169 {strides = array<i32>} : memref<8x32xf32, #tpu.memory_space<vmem>>, vector<8x32xf32>,
    } else {
    }
    %c0 = arith.constant 0 : index
    %c0_1 = arith.constant 0 : index
    %3 = vector.load %arg16[%c0, %c0_1] : memref<8x32xf32, #tpu.memory_space<vmem>>, vector<8x32xf32>
    %c0_2 = arith.constant 0 : index
    %c0_3 = arith.constant 0 : index
    %c0_4 = arith.constant 0 : index
    %4 = vector.load %arg3[%c0_2, %c0_3, %c0_4] : memref<1x32x96xf32, #tpu.memory_space<vmem>>, vector<1x32x96xf32>
    %5 = vector.shape_cast %4 : vector<1x32x96xf32> to vector<32x96xf32>
    %cst = arith.constant dense<0.000000e+00> : vector<8x96xf32>
    %6 = tpu.matmul %3, %5, %cst {dimension_numbers = #tpu.dot_dimension_numbers<[1], [0], [0], [1], [0, 0, 1, 1], [], []>} : vector<8x32xf32>, vector<32x96xf32>, vector<8x96xf32> -> vector<8x96xf32>
    %c0_5 = arith.constant 0 : index
    %c0_6 = arith.constant 0 : index
    %c0_7 = arith.constant 0 : index
    %7 = vector.load %arg4[%c0_5, %c0_6, %c0_7] : memref<1x1x96xf32, #tpu.memory_space<vmem>>, vector<1x1x96xf32>
    %8 = vector.shape_cast %7 : vector<1x1x96xf32> to vector<1x96xf32>
    %9 = vector.broadcast %8 : vector<1x96xf32> to vector<8x96xf32>
    %10 = arith.addf %6, %9 : vector<8x96xf32>
    %11 = vector.extract_strided_slice %10 {offsets = [0, 0], sizes = [8, 32], strides = [1, 1]} : vector<8x96xf32> to vector<8x32xf32>
    %12 = vector.extract_strided_slice %10 {offsets = [0, 32], sizes = [8, 32], strides = [1, 1]} : vector<8x96xf32> to vector<8x32xf32>
    %13 = vector.extract_strided_slice %10 {offsets = [0, 64], sizes = [8, 32], strides = [1, 1]} : vector<8x96xf32> to vector<8x32xf32>
    %14 = vector.extract_strided_slice %11 {offsets = [0, 0], sizes = [8, 8], strides = [1, 1]} : vector<8x32xf32> to vector<8x8xf32>
    %15 = vector.extract_strided_slice %12 {offsets = [0, 0], sizes = [8, 8], strides = [1, 1]} : vector<8x32xf32> to vector<8x8xf32>
    %16 = vector.extract_strided_slice %13 {offsets = [0, 0], sizes = [8, 8], strides = [1, 1]} : vector<8x32xf32> to vector<8x8xf32>
    "tpu.trace_start"() <{level = 10 : i32, message = "qd,kd->qk"}> : () -> ()
    %cst_8 = arith.constant dense<0.000000e+00> : vector<8x8xf32>
    %17 = tpu.matmul %14, %15, %cst_8 {dimension_numbers = #tpu.dot_dimension_numbers<[1], [1], [0], [0], [0, 0, 1, 0], [], []>} : vector<8x8xf32>, vector<8x8xf32>, vector<8x8xf32> -> vector<8x8xf32>
    "tpu.trace_stop"() : () -> ()
    %cst_9 = arith.constant 0.353553385 : f32
    %18 = vector.broadcast %cst_9 : f32 to vector<8x8xf32>
    %19 = arith.mulf %17, %18 : vector<8x8xf32>
    %cst_10 = arith.constant dense<0xFF800000> : vector<8xf32>
    %20 = vector.multi_reduction <maximumf>, %19, %cst_10 [1] : vector<8x8xf32> to vector<8xf32>
    %21 = vector.shape_cast %20 : vector<8xf32> to vector<8x1xf32>
    %22 = vector.broadcast %21 : vector<8x1xf32> to vector<8x8xf32>
    %23 = arith.subf %19, %22 : vector<8x8xf32>
    %24 = math.exp %23 : vector<8x8xf32>
    %cst_11 = arith.constant dense<0.000000e+00> : vector<8xf32>
    %25 = vector.multi_reduction <add>, %24, %cst_11 [1] : vector<8x8xf32> to vector<8xf32>
    %26 = vector.shape_cast %25 : vector<8xf32> to vector<8x1xf32>
    %27 = tpu.reciprocal %26 {approx = true} : vector<8x1xf32> -> vector<8x1xf32>
    %28 = vector.broadcast %27 : vector<8x1xf32> to vector<8x8xf32>
    %29 = arith.mulf %24, %28 : vector<8x8xf32>
    %cst_12 = arith.constant dense<0.000000e+00> : vector<8x8xf32>
    %30 = tpu.matmul %29, %16, %cst_12 {dimension_numbers = #tpu.dot_dimension_numbers<[1], [0], [0], [1], [0, 0, 1, 1], [], []>} : vector<8x8xf32>, vector<8x8xf32>, vector<8x8xf32> -> vector<8x8xf32>
    %c0_13 = arith.constant 0 : index
    %c0_14 = arith.constant 0 : index
    %31 = vector.load %arg17[%c0_13, %c0_14] : memref<8x32xf32, #tpu.memory_space<vmem>>, vector<8x8xf32>
    tpu.vector_store %arg17[%c0_13, %c0_14], %30 {strides = array<i32>} : memref<8x32xf32, #tpu.memory_space<vmem>>, vector<8x8xf32>,
    %32 = vector.extract_strided_slice %11 {offsets = [0, 8], sizes = [8, 8], strides = [1, 1]} : vector<8x32xf32> to vector<8x8xf32>
    %33 = vector.extract_strided_slice %12 {offsets = [0, 8], sizes = [8, 8], strides = [1, 1]} : vector<8x32xf32> to vector<8x8xf32>
    %34 = vector.extract_strided_slice %13 {offsets = [0, 8], sizes = [8, 8], strides = [1, 1]} : vector<8x32xf32> to vector<8x8xf32>
    "tpu.trace_start"() <{level = 10 : i32, message = "qd,kd->qk"}> : () -> ()
    %cst_15 = arith.constant dense<0.000000e+00> : vector<8x8xf32>
    %35 = tpu.matmul %32, %33, %cst_15 {dimension_numbers = #tpu.dot_dimension_numbers<[1], [1], [0], [0], [0, 0, 1, 0], [], []>} : vector<8x8xf32>, vector<8x8xf32>, vector<8x8xf32> -> vector<8x8xf32>
    "tpu.trace_stop"() : () -> ()
    %cst_16 = arith.constant 0.353553385 : f32
    %36 = vector.broadcast %cst_16 : f32 to vector<8x8xf32>
    %37 = arith.mulf %35, %36 : vector<8x8xf32>
    %cst_17 = arith.constant dense<0xFF800000> : vector<8xf32>
    %38 = vector.multi_reduction <maximumf>, %37, %cst_17 [1] : vector<8x8xf32> to vector<8xf32>
    %39 = vector.shape_cast %38 : vector<8xf32> to vector<8x1xf32>
    %40 = vector.broadcast %39 : vector<8x1xf32> to vector<8x8xf32>
    %41 = arith.subf %37, %40 : vector<8x8xf32>
    %42 = math.exp %41 : vector<8x8xf32>
    %cst_18 = arith.constant dense<0.000000e+00> : vector<8xf32>
    %43 = vector.multi_reduction <add>, %42, %cst_18 [1] : vector<8x8xf32> to vector<8xf32>
    %44 = vector.shape_cast %43 : vector<8xf32> to vector<8x1xf32>
    %45 = tpu.reciprocal %44 {approx = true} : vector<8x1xf32> -> vector<8x1xf32>
    %46 = vector.broadcast %45 : vector<8x1xf32> to vector<8x8xf32>
    %47 = arith.mulf %42, %46 : vector<8x8xf32>
    %cst_19 = arith.constant dense<0.000000e+00> : vector<8x8xf32>
    %48 = tpu.matmul %47, %34, %cst_19 {dimension_numbers = #tpu.dot_dimension_numbers<[1], [0], [0], [1], [0, 0, 1, 1], [], []>} : vector<8x8xf32>, vector<8x8xf32>, vector<8x8xf32> -> vector<8x8xf32>
    %c0_20 = arith.constant 0 : index
    %c8 = arith.constant 8 : index
    %49 = vector.load %arg17[%c0_20, %c8] : memref<8x32xf32, #tpu.memory_space<vmem>>, vector<8x8xf32>
    tpu.vector_store %arg17[%c0_20, %c8], %48 {strides = array<i32>} : memref<8x32xf32, #tpu.memory_space<vmem>>, vector<8x8xf32>,
    %50 = vector.extract_strided_slice %11 {offsets = [0, 16], sizes = [8, 8], strides = [1, 1]} : vector<8x32xf32> to vector<8x8xf32>
    %51 = vector.extract_strided_slice %12 {offsets = [0, 16], sizes = [8, 8], strides = [1, 1]} : vector<8x32xf32> to vector<8x8xf32>
    %52 = vector.extract_strided_slice %13 {offsets = [0, 16], sizes = [8, 8], strides = [1, 1]} : vector<8x32xf32> to vector<8x8xf32>
    "tpu.trace_start"() <{level = 10 : i32, message = "qd,kd->qk"}> : () -> ()
    %cst_21 = arith.constant dense<0.000000e+00> : vector<8x8xf32>
    %53 = tpu.matmul %50, %51, %cst_21 {dimension_numbers = #tpu.dot_dimension_numbers<[1], [1], [0], [0], [0, 0, 1, 0], [], []>} : vector<8x8xf32>, vector<8x8xf32>, vector<8x8xf32> -> vector<8x8xf32>
    "tpu.trace_stop"() : () -> ()
    %cst_22 = arith.constant 0.353553385 : f32
    %54 = vector.broadcast %cst_22 : f32 to vector<8x8xf32>
    %55 = arith.mulf %53, %54 : vector<8x8xf32>
    %cst_23 = arith.constant dense<0xFF800000> : vector<8xf32>
    %56 = vector.multi_reduction <maximumf>, %55, %cst_23 [1] : vector<8x8xf32> to vector<8xf32>
    %57 = vector.shape_cast %56 : vector<8xf32> to vector<8x1xf32>
    %58 = vector.broadcast %57 : vector<8x1xf32> to vector<8x8xf32>
    %59 = arith.subf %55, %58 : vector<8x8xf32>
    %60 = math.exp %59 : vector<8x8xf32>
    %cst_24 = arith.constant dense<0.000000e+00> : vector<8xf32>
    %61 = vector.multi_reduction <add>, %60, %cst_24 [1] : vector<8x8xf32> to vector<8xf32>
    %62 = vector.shape_cast %61 : vector<8xf32> to vector<8x1xf32>
    %63 = tpu.reciprocal %62 {approx = true} : vector<8x1xf32> -> vector<8x1xf32>
    %64 = vector.broadcast %63 : vector<8x1xf32> to vector<8x8xf32>
    %65 = arith.mulf %60, %64 : vector<8x8xf32>
    %cst_25 = arith.constant dense<0.000000e+00> : vector<8x8xf32>
    %66 = tpu.matmul %65, %52, %cst_25 {dimension_numbers = #tpu.dot_dimension_numbers<[1], [0], [0], [1], [0, 0, 1, 1], [], []>} : vector<8x8xf32>, vector<8x8xf32>, vector<8x8xf32> -> vector<8x8xf32>
    %c0_26 = arith.constant 0 : index
    %c16 = arith.constant 16 : index
    %67 = vector.load %arg17[%c0_26, %c16] : memref<8x32xf32, #tpu.memory_space<vmem>>, vector<8x8xf32>
    tpu.vector_store %arg17[%c0_26, %c16], %66 {strides = array<i32>} : memref<8x32xf32, #tpu.memory_space<vmem>>, vector<8x8xf32>,
    %68 = vector.extract_strided_slice %11 {offsets = [0, 24], sizes = [8, 8], strides = [1, 1]} : vector<8x32xf32> to vector<8x8xf32>
    %69 = vector.extract_strided_slice %12 {offsets = [0, 24], sizes = [8, 8], strides = [1, 1]} : vector<8x32xf32> to vector<8x8xf32>
    %70 = vector.extract_strided_slice %13 {offsets = [0, 24], sizes = [8, 8], strides = [1, 1]} : vector<8x32xf32> to vector<8x8xf32>
    "tpu.trace_start"() <{level = 10 : i32, message = "qd,kd->qk"}> : () -> ()
    %cst_27 = arith.constant dense<0.000000e+00> : vector<8x8xf32>
    %71 = tpu.matmul %68, %69, %cst_27 {dimension_numbers = #tpu.dot_dimension_numbers<[1], [1], [0], [0], [0, 0, 1, 0], [], []>} : vector<8x8xf32>, vector<8x8xf32>, vector<8x8xf32> -> vector<8x8xf32>
    "tpu.trace_stop"() : () -> ()
    %cst_28 = arith.constant 0.353553385 : f32
    %72 = vector.broadcast %cst_28 : f32 to vector<8x8xf32>
    %73 = arith.mulf %71, %72 : vector<8x8xf32>
    %cst_29 = arith.constant dense<0xFF800000> : vector<8xf32>
    %74 = vector.multi_reduction <maximumf>, %73, %cst_29 [1] : vector<8x8xf32> to vector<8xf32>
    %75 = vector.shape_cast %74 : vector<8xf32> to vector<8x1xf32>
    %76 = vector.broadcast %75 : vector<8x1xf32> to vector<8x8xf32>
    %77 = arith.subf %73, %76 : vector<8x8xf32>
    %78 = math.exp %77 : vector<8x8xf32>
    %cst_30 = arith.constant dense<0.000000e+00> : vector<8xf32>
    %79 = vector.multi_reduction <add>, %78, %cst_30 [1] : vector<8x8xf32> to vector<8xf32>
    %80 = vector.shape_cast %79 : vector<8xf32> to vector<8x1xf32>
    %81 = tpu.reciprocal %80 {approx = true} : vector<8x1xf32> -> vector<8x1xf32>
    %82 = vector.broadcast %81 : vector<8x1xf32> to vector<8x8xf32>
    %83 = arith.mulf %78, %82 : vector<8x8xf32>
    %cst_31 = arith.constant dense<0.000000e+00> : vector<8x8xf32>
    %84 = tpu.matmul %83, %70, %cst_31 {dimension_numbers = #tpu.dot_dimension_numbers<[1], [0], [0], [1], [0, 0, 1, 1], [], []>} : vector<8x8xf32>, vector<8x8xf32>, vector<8x8xf32> -> vector<8x8xf32>
    %c0_32 = arith.constant 0 : index
    %c24 = arith.constant 24 : index
    %85 = vector.load %arg17[%c0_32, %c24] : memref<8x32xf32, #tpu.memory_space<vmem>>, vector<8x8xf32>
    tpu.vector_store %arg17[%c0_32, %c24], %84 {strides = array<i32>} : memref<8x32xf32, #tpu.memory_space<vmem>>, vector<8x8xf32>,
    %c0_33 = arith.constant 0 : index
    %c0_34 = arith.constant 0 : index
    %86 = vector.load %arg17[%c0_33, %c0_34] : memref<8x32xf32, #tpu.memory_space<vmem>>, vector<8x32xf32>
    %c0_35 = arith.constant 0 : index
    %c0_36 = arith.constant 0 : index
    %c0_37 = arith.constant 0 : index
    %87 = vector.load %arg5[%c0_35, %c0_36, %c0_37] : memref<1x32x32xf32, #tpu.memory_space<vmem>>, vector<1x32x32xf32>
    %88 = vector.shape_cast %87 : vector<1x32x32xf32> to vector<32x32xf32>
    %cst_38 = arith.constant dense<0.000000e+00> : vector<8x32xf32>
    %89 = tpu.matmul %86, %88, %cst_38 {dimension_numbers = #tpu.dot_dimension_numbers<[1], [0], [0], [1], [0, 0, 1, 1], [], []>} : vector<8x32xf32>, vector<32x32xf32>, vector<8x32xf32> -> vector<8x32xf32>
    %c0_39 = arith.constant 0 : index
    %c0_40 = arith.constant 0 : index
    %c0_41 = arith.constant 0 : index
    %90 = vector.load %arg6[%c0_39, %c0_40, %c0_41] : memref<1x1x32xf32, #tpu.memory_space<vmem>>, vector<1x1x32xf32>
    %91 = vector.shape_cast %90 : vector<1x1x32xf32> to vector<1x32xf32>
    %92 = vector.broadcast %91 : vector<1x32xf32> to vector<8x32xf32>
    %93 = arith.addf %89, %92 : vector<8x32xf32>
    %94 = arith.addf %3, %93 : vector<8x32xf32>
    %c0_42 = arith.constant 0 : index
    %c0_43 = arith.constant 0 : index
    %c0_44 = arith.constant 0 : index
    %95 = vector.load %arg7[%c0_42, %c0_43, %c0_44] : memref<1x1x32xf32, #tpu.memory_space<vmem>>, vector<1x1x32xf32>
    %96 = vector.shape_cast %95 : vector<1x1x32xf32> to vector<1x32xf32>
    %c0_45 = arith.constant 0 : index
    %c0_46 = arith.constant 0 : index
    %c0_47 = arith.constant 0 : index
    %97 = vector.load %arg8[%c0_45, %c0_46, %c0_47] : memref<1x1x32xf32, #tpu.memory_space<vmem>>, vector<1x1x32xf32>
    %98 = vector.shape_cast %97 : vector<1x1x32xf32> to vector<1x32xf32>
    %cst_48 = arith.constant dense<0.000000e+00> : vector<8xf32>
    %99 = vector.multi_reduction <add>, %94, %cst_48 [1] : vector<8x32xf32> to vector<8xf32>
    %100 = vector.shape_cast %99 : vector<8xf32> to vector<8x1xf32>
    %cst_49 = arith.constant 3.200000e+01 : f32
    %101 = vector.broadcast %cst_49 : f32 to vector<8x1xf32>
    %102 = arith.divf %100, %101 : vector<8x1xf32>
    %103 = vector.broadcast %102 : vector<8x1xf32> to vector<8x32xf32>
    %104 = arith.subf %94, %103 : vector<8x32xf32>
    %105 = arith.mulf %104, %104 : vector<8x32xf32>
    %cst_50 = arith.constant dense<0.000000e+00> : vector<8xf32>
    %106 = vector.multi_reduction <add>, %105, %cst_50 [1] : vector<8x32xf32> to vector<8xf32>
    %107 = vector.shape_cast %106 : vector<8xf32> to vector<8x1xf32>
    %cst_51 = arith.constant 3.200000e+01 : f32
    %108 = vector.broadcast %cst_51 : f32 to vector<8x1xf32>
    %109 = arith.divf %107, %108 : vector<8x1xf32>
    %110 = vector.broadcast %102 : vector<8x1xf32> to vector<8x32xf32>
    %111 = arith.subf %94, %110 : vector<8x32xf32>
    %cst_52 = arith.constant 9.99999974E-6 : f32
    %112 = vector.broadcast %cst_52 : f32 to vector<8x1xf32>
    %113 = arith.addf %109, %112 : vector<8x1xf32>
    %114 = math.rsqrt %113 : vector<8x1xf32>
    %115 = vector.broadcast %114 : vector<8x1xf32> to vector<8x32xf32>
    %116 = arith.mulf %111, %115 : vector<8x32xf32>
    %117 = vector.broadcast %96 : vector<1x32xf32> to vector<8x32xf32>
    %118 = arith.mulf %116, %117 : vector<8x32xf32>
    %119 = vector.broadcast %98 : vector<1x32xf32> to vector<8x32xf32>
    %120 = arith.addf %118, %119 : vector<8x32xf32>
    %c0_53 = arith.constant 0 : index
    %c0_54 = arith.constant 0 : index
    %c0_55 = arith.constant 0 : index
    %121 = vector.load %arg9[%c0_53, %c0_54, %c0_55] : memref<1x32x64xf32, #tpu.memory_space<vmem>>, vector<1x32x64xf32>
    %122 = vector.shape_cast %121 : vector<1x32x64xf32> to vector<32x64xf32>
    %cst_56 = arith.constant dense<0.000000e+00> : vector<8x64xf32>
    %123 = tpu.matmul %120, %122, %cst_56 {dimension_numbers = #tpu.dot_dimension_numbers<[1], [0], [0], [1], [0, 0, 1, 1], [], []>} : vector<8x32xf32>, vector<32x64xf32>, vector<8x64xf32> -> vector<8x64xf32>
    %c0_57 = arith.constant 0 : index
    %c0_58 = arith.constant 0 : index
    %c0_59 = arith.constant 0 : index
    %124 = vector.load %arg10[%c0_57, %c0_58, %c0_59] : memref<1x1x64xf32, #tpu.memory_space<vmem>>, vector<1x1x64xf32>
    %125 = vector.shape_cast %124 : vector<1x1x64xf32> to vector<1x64xf32>
    %126 = vector.broadcast %125 : vector<1x64xf32> to vector<8x64xf32>
    %127 = arith.addf %123, %126 : vector<8x64xf32>
    %cst_60 = arith.constant 0.000000e+00 : f32
    %128 = vector.broadcast %cst_60 : f32 to vector<8x64xf32>
    %129 = arith.maximumf %127, %128 : vector<8x64xf32>
    %c0_61 = arith.constant 0 : index
    %c0_62 = arith.constant 0 : index
    %c0_63 = arith.constant 0 : index
    %130 = vector.load %arg11[%c0_61, %c0_62, %c0_63] : memref<1x64x32xf32, #tpu.memory_space<vmem>>, vector<1x64x32xf32>
    %131 = vector.shape_cast %130 : vector<1x64x32xf32> to vector<64x32xf32>
    %cst_64 = arith.constant dense<0.000000e+00> : vector<8x32xf32>
    %132 = tpu.matmul %129, %131, %cst_64 {dimension_numbers = #tpu.dot_dimension_numbers<[1], [0], [0], [1], [0, 0, 1, 1], [], []>} : vector<8x64xf32>, vector<64x32xf32>, vector<8x32xf32> -> vector<8x32xf32>
    %c0_65 = arith.constant 0 : index
    %c0_66 = arith.constant 0 : index
    %c0_67 = arith.constant 0 : index
    %133 = vector.load %arg12[%c0_65, %c0_66, %c0_67] : memref<1x1x32xf32, #tpu.memory_space<vmem>>, vector<1x1x32xf32>
    %134 = vector.shape_cast %133 : vector<1x1x32xf32> to vector<1x32xf32>
    %135 = vector.broadcast %134 : vector<1x32xf32> to vector<8x32xf32>
    %136 = arith.addf %132, %135 : vector<8x32xf32>
    %137 = arith.addf %120, %136 : vector<8x32xf32>
    %c0_68 = arith.constant 0 : index
    %c0_69 = arith.constant 0 : index
    %c0_70 = arith.constant 0 : index
    %138 = vector.load %arg13[%c0_68, %c0_69, %c0_70] : memref<1x1x32xf32, #tpu.memory_space<vmem>>, vector<1x1x32xf32>
    %139 = vector.shape_cast %138 : vector<1x1x32xf32> to vector<1x32xf32>
    %c0_71 = arith.constant 0 : index
    %c0_72 = arith.constant 0 : index
    %c0_73 = arith.constant 0 : index
    %140 = vector.load %arg14[%c0_71, %c0_72, %c0_73] : memref<1x1x32xf32, #tpu.memory_space<vmem>>, vector<1x1x32xf32>
    %141 = vector.shape_cast %140 : vector<1x1x32xf32> to vector<1x32xf32>
    %cst_74 = arith.constant dense<0.000000e+00> : vector<8xf32>
    %142 = vector.multi_reduction <add>, %137, %cst_74 [1] : vector<8x32xf32> to vector<8xf32>
    %143 = vector.shape_cast %142 : vector<8xf32> to vector<8x1xf32>
    %cst_75 = arith.constant 3.200000e+01 : f32
    %144 = vector.broadcast %cst_75 : f32 to vector<8x1xf32>
    %145 = arith.divf %143, %144 : vector<8x1xf32>
    %146 = vector.broadcast %145 : vector<8x1xf32> to vector<8x32xf32>
    %147 = arith.subf %137, %146 : vector<8x32xf32>
    %148 = arith.mulf %147, %147 : vector<8x32xf32>
    %cst_76 = arith.constant dense<0.000000e+00> : vector<8xf32>
    %149 = vector.multi_reduction <add>, %148, %cst_76 [1] : vector<8x32xf32> to vector<8xf32>
    %150 = vector.shape_cast %149 : vector<8xf32> to vector<8x1xf32>
    %cst_77 = arith.constant 3.200000e+01 : f32
    %151 = vector.broadcast %cst_77 : f32 to vector<8x1xf32>
    %152 = arith.divf %150, %151 : vector<8x1xf32>
    %153 = vector.broadcast %145 : vector<8x1xf32> to vector<8x32xf32>
    %154 = arith.subf %137, %153 : vector<8x32xf32>
    %cst_78 = arith.constant 9.99999974E-6 : f32
    %155 = vector.broadcast %cst_78 : f32 to vector<8x1xf32>
    %156 = arith.addf %152, %155 : vector<8x1xf32>
    %157 = math.rsqrt %156 : vector<8x1xf32>
    %158 = vector.broadcast %157 : vector<8x1xf32> to vector<8x32xf32>
    %159 = arith.mulf %154, %158 : vector<8x32xf32>
    %160 = vector.broadcast %139 : vector<1x32xf32> to vector<8x32xf32>
    %161 = arith.mulf %159, %160 : vector<8x32xf32>
    %162 = vector.broadcast %141 : vector<1x32xf32> to vector<8x32xf32>
    %163 = arith.addf %161, %162 : vector<8x32xf32>
    %c0_79 = arith.constant 0 : index
    %c0_80 = arith.constant 0 : index
    %164 = vector.load %arg16[%c0_79, %c0_80] : memref<8x32xf32, #tpu.memory_space<vmem>>, vector<8x32xf32>
    tpu.vector_store %arg16[%c0_79, %c0_80], %163 {strides = array<i32>} : memref<8x32xf32, #tpu.memory_space<vmem>>, vector<8x32xf32>,
    %c1_i32 = arith.constant 1 : i32
    %165 = arith.cmpi eq, %arg1, %c1_i32 : i32
    %166 = arith.extui %165 : i1 to i32
    %c0_i32_81 = arith.constant 0 : i32
    %167 = arith.cmpi ne, %166, %c0_i32_81 : i32
    scf.if %167 {
      %c0_82 = arith.constant 0 : index
      %c0_83 = arith.constant 0 : index
      %c0_84 = arith.constant 0 : index
      %168 = vector.load %arg15[%c0_82, %c0_83, %c0_84] : memref<1x8x32xf32, #tpu.memory_space<vmem>>, vector<1x8x32xf32>
      %169 = vector.shape_cast %168 : vector<1x8x32xf32> to vector<8x32xf32>
      %170 = vector.shape_cast %163 : vector<8x32xf32> to vector<1x8x32xf32>
      tpu.vector_store %arg15[%c0_82, %c0_83, %c0_84], %170 {strides = array<i32>} : memref<1x8x32xf32, #tpu.memory_space<vmem>>, vector<1x8x32xf32>,
    } else {
    }
    return
  }
  func.func @transform_0(%arg0: i32, %arg1: i32) -> (i32, i32, i32) {
    %c0_i32 = arith.constant 0 : i32
    %c0_i32_0 = arith.constant 0 : i32
    %c0_i32_1 = arith.constant 0 : i32
    return %arg0, %c0_i32, %c0_i32_0 : i32, i32, i32
  }
  func.func @transform_1(%arg0: i32, %arg1: i32) -> (i32, i32, i32) {
    %c0_i32 = arith.constant 0 : i32
    %c0_i32_0 = arith.constant 0 : i32
    %c0_i32_1 = arith.constant 0 : i32
    return %arg1, %c0_i32, %c0_i32_0 : i32, i32, i32
  }
  func.func @transform_2(%arg0: i32, %arg1: i32) -> (i32, i32, i32) {
    %c0_i32 = arith.constant 0 : i32
    %c0_i32_0 = arith.constant 0 : i32
    %c0_i32_1 = arith.constant 0 : i32
    return %arg1, %c0_i32, %c0_i32_0 : i32, i32, i32
  }
  func.func @transform_3(%arg0: i32, %arg1: i32) -> (i32, i32, i32) {
    %c0_i32 = arith.constant 0 : i32
    %c0_i32_0 = arith.constant 0 : i32
    %c0_i32_1 = arith.constant 0 : i32
    return %arg1, %c0_i32, %c0_i32_0 : i32, i32, i32
  }
  func.func @transform_4(%arg0: i32, %arg1: i32) -> (i32, i32, i32) {
    %c0_i32 = arith.constant 0 : i32
    %c0_i32_0 = arith.constant 0 : i32
    %c0_i32_1 = arith.constant 0 : i32
    return %arg1, %c0_i32, %c0_i32_0 : i32, i32, i32
  }
  func.func @transform_5(%arg0: i32, %arg1: i32) -> (i32, i32, i32) {
    %c0_i32 = arith.constant 0 : i32
    %c0_i32_0 = arith.constant 0 : i32
    %c0_i32_1 = arith.constant 0 : i32
    return %arg1, %c0_i32, %c0_i32_0 : i32, i32, i32
  }
  func.func @transform_6(%arg0: i32, %arg1: i32) -> (i32, i32, i32) {
    %c0_i32 = arith.constant 0 : i32
    %c0_i32_0 = arith.constant 0 : i32
    %c0_i32_1 = arith.constant 0 : i32
    return %arg1, %c0_i32, %c0_i32_0 : i32, i32, i32
  }
  func.func @transform_7(%arg0: i32, %arg1: i32) -> (i32, i32, i32) {
    %c0_i32 = arith.constant 0 : i32
    %c0_i32_0 = arith.constant 0 : i32
    %c0_i32_1 = arith.constant 0 : i32
    return %arg1, %c0_i32, %c0_i32_0 : i32, i32, i32
  }
  func.func @transform_8(%arg0: i32, %arg1: i32) -> (i32, i32, i32) {
    %c0_i32 = arith.constant 0 : i32
    %c0_i32_0 = arith.constant 0 : i32
    %c0_i32_1 = arith.constant 0 : i32
    return %arg1, %c0_i32, %c0_i32_0 : i32, i32, i32
  }
  func.func @transform_9(%arg0: i32, %arg1: i32) -> (i32, i32, i32) {
    %c0_i32 = arith.constant 0 : i32
    %c0_i32_0 = arith.constant 0 : i32
    %c0_i32_1 = arith.constant 0 : i32
    return %arg1, %c0_i32, %c0_i32_0 : i32, i32, i32
  }
  func.func @transform_10(%arg0: i32, %arg1: i32) -> (i32, i32, i32) {
    %c0_i32 = arith.constant 0 : i32
    %c0_i32_0 = arith.constant 0 : i32
    %c0_i32_1 = arith.constant 0 : i32
    return %arg1, %c0_i32, %c0_i32_0 : i32, i32, i32
  }
  func.func @transform_11(%arg0: i32, %arg1: i32) -> (i32, i32, i32) {
    %c0_i32 = arith.constant 0 : i32
    %c0_i32_0 = arith.constant 0 : i32
    %c0_i32_1 = arith.constant 0 : i32
    return %arg1, %c0_i32, %c0_i32_0 : i32, i32, i32
  }
  func.func @transform_12(%arg0: i32, %arg1: i32) -> (i32, i32, i32) {
    %c0_i32 = arith.constant 0 : i32
    %c0_i32_0 = arith.constant 0 : i32
    %c0_i32_1 = arith.constant 0 : i32
    return %arg1, %c0_i32, %c0_i32_0 : i32, i32, i32
  }
  func.func @transform_13(%arg0: i32, %arg1: i32) -> (i32, i32, i32) {
    %c0_i32 = arith.constant 0 : i32
    %c0_i32_0 = arith.constant 0 : i32
    %c0_i32_1 = arith.constant 0 : i32
    return %arg0, %c0_i32, %c0_i32_0 : i32, i32, i32
  }
}

</mosaic_0001>

<bundles_post_ra>
// kernel: tpu_custom_call.1
= control target key start
LH: loop header
LB: loop body
LE: loop exit
PB: predicated region body
PF: predicated region fallthrough
CT: control target
= control target key end

     0   :  { %s2916_s0 = inlined_call_operand.hbm [shape: f32[2,8,32], index: 0, kind: input, shape index: {}]   ;;  %s2917_s1 = inlined_call_operand.vmem [shape: f32[2,32,96], index: 1, kind: input, shape index: {}]   ;;  %s2918_s2 = inlined_call_operand.vmem [shape: f32[2,1,96], index: 2, kind: input, shape index: {}]   ;;  %s2919_s3 = inlined_call_operand.vmem [shape: f32[2,32,32], index: 3, kind: input, shape index: {}]   ;;  %s2920_s4 = inlined_call_operand.vmem [shape: f32[2,1,32], index: 4, kind: input, shape index: {}]   ;;  %s2921_s5 = inlined_call_operand.vmem [shape: f32[2,1,32], index: 5, kind: input, shape index: {}]   ;;  %s2922_s6 = inlined_call_operand.vmem [shape: f32[2,1,32], index: 6, kind: input, shape index: {}]   ;;  %s2923_s7 = inlined_call_operand.vmem [shape: f32[2,32,64], index: 7, kind: input, shape index: {}]   ;;  %s2924_s8 = inlined_call_operand.vmem [shape: f32[2,1,64], index: 8, kind: input, shape index: {}]   ;;  %s2925_s9 = inlined_call_operand.vmem [shape: f32[2,64,32], index: 9, kind: input, shape index: {}]   ;;  %s2926_s10 = inlined_call_operand.vmem [shape: f32[2,1,32], index: 10, kind: input, shape index: {}]   ;;  %s2927_s11 = inlined_call_operand.vmem [shape: f32[2,1,32], index: 11, kind: input, shape index: {}]   ;;  %s2928_s12 = inlined_call_operand.vmem [shape: f32[2,1,32], index: 12, kind: input, shape index: {}]   ;;  %s2929_s13 = inlined_call_operand.hbm [shape: f32[2,8,32], index: 13, kind: output, shape index: {}]  }
   0x1   :  { %2945 = sst [smem:[#allocation24_spill]] %s2916_s0 }
   0x2   :  { %2946 = sst [smem:[#allocation25_spill]] %s2917_s1 }
   0x3   :  { %2947 = sst [smem:[#allocation26_spill]] %s2919_s3 }
   0x4   :  { %2948 = sst [smem:[#allocation27_spill]] %s2923_s7 }
   0x5   :  { %2949 = sst [smem:[#allocation28_spill]] %s2928_s12 }
   0x6   :  { %2950 = sst [smem:[#allocation29_spill]] %s2929_s13 }
   0x7   :  { %18 = vsyncpa [#allocation5], 0 }
   0x8   :  { %20 = vsyncpa [#allocation5 + $0x1], 0 }
   0x9   :  { %21 = vsyncpa [#allocation6], 0 }
   0xa   :  { %23 = vsyncpa [#allocation6 + $0x1], 0  ;;  %s2524_s25 = smov 0   ;;  %s2526_s26 = smov 0  }
   0xb   :  { %s2528_s27 = smov 0   ;;  %s2530_s28 = smov 0  }
   0xc   :  { %s2532_s29 = smov 0   ;;  %s2534_s30 = smov 0  }
   0xd   :  { %s2536_s14 = smov 0   ;;  %s2538_s15 = smov 0  }
   0xe LB: > { %2951 = sst [smem:[#allocation10_spill]] %s2405_s25  ;;  %s1977_s16 = sadd.s32 4294967295, %s2433_s15   ;;  %s2433_s15 = sphi %s2538_s15, %s29_s15   ;;  %s2429_s14 = sphi %s2536_s14, %s2999_s14   ;;  %s2425_s30 = sphi %s2534_s30, %s2998_s30   ;;  %s2421_s29 = sphi %s2532_s29, %s2997_s29   ;;  %s2417_s28 = sphi %s2530_s28, %s2996_s28   ;;  %s2413_s27 = sphi %s2528_s27, %s2995_s27   ;;  %s2409_s26 = sphi %s2526_s26, %s2994_s26   ;;  %s2405_s25 = sphi %s2524_s25, %s2993_s25  }
   0xf   : > { %2952 = sst [smem:[#allocation11_spill]] %s2409_s26  ;;  %s1978_s17 = sadd.s32 4294967294, %s2433_s15  }
  0x10   : > { %2953 = sst [smem:[#allocation12_spill]] %s2413_s27  ;;  %s38_s18 = sadd.s32 1, %s2425_s30 }
  0x11   : > { %2954 = sst [smem:[#allocation13_spill]] %s2417_s28  ;;  %s41_s19 = sadd.s32 1, %s2429_s14 }
  0x12   : > { %2955 = sst [smem:[#allocation14_spill]] %s2421_s29  ;;  %p39_p0 = scmp.ge.s32.totalorder %s38_s18, 2 }
  0x13   : > { %2956 = sst [smem:[#allocation15_spill]] %s2425_s30  ;;  %s48_s20 = sadd.s32 1, %s2413_s27 }
  0x14   : > { %2957 = sst [smem:[#allocation16_spill]] %s2429_s14  ;;  %p55_p1 = scmp.ne.s32.totalorder %s2413_s27, %s2409_s26 }
  0x15   : > { %2958 = sst [smem:[#allocation17_spill]] %s2433_s15  ;;  %p56_p2 = scmp.eq.s32.totalorder %s2433_s15, 0 }
  0x16   : > { %s3001_s18 = smov (%p39_p0, %s38_s18), 0  ;;  %s3003_s19 = smov (!%p39_p0, %s41_s19), %s2429_s14 }
  0x17   : > { %2959 = sst [smem:[#allocation18_spill]] %s3001_s18  ;;  %p2575_p3 = por %p56_p2, %p55_p1 }
  0x18   : > { %p61_p4 = scmp.ne.s32.totalorder %s2409_s26, %s2405_s25  ;;  %p43_p5 = scmp.ge.s32.totalorder %s3003_s19, 2 }
  0x19   : > { %p62_p6 = scmp.eq.s32.totalorder %s1977_s16, 0  ;;  %p397_p7 = scmp.eq.s32.totalorder %s1977_s16, 3 }
  0x1a   : > { %p403_p8 = scmp.eq.s32.totalorder %s1978_s17, 3  ;;  %s3005_s19 = smov (%p43_p5, %s3003_s19), 0 }
  0x1b   : > { %2961 = sst [smem:[#allocation19_spill]] %s3005_s19  ;;  %p2583_p9 = por %p62_p6, %p61_p4 }
  0x1c   : > { %p2587_p10 = por %p397_p7, %p55_p1  ;;  %s45_s24 = ssub.s32 %s2429_s14, %s3005_s19 }
  0x1d   : > { %p2593_p11 = por %p403_p8, %p61_p4  ;;  %p46_p12 = scmp.eq.s32.totalorder %s45_s24, 0 }
  0x1e   : > { %s2963_s23 = scalar_select %p2587_p10, 1, 0 }
  0x1f   : > { %s2965_s18 = scalar_select %p2593_p11, 1, 0 }
  0x20   : > { %2964 = sst [smem:[#allocation20_spill]] %s2963_s23  ;;  %p2202_p13 = scmp.lt.s32.totalorder %s2433_s15, 4 }
  0x21   : > { %2966 = sst [smem:[#allocation21_spill]] %s2965_s18  ;;  %s423_s16 = sand.u32 1, %s2413_s27  }
  0x22   : > { %s2600_s17 = scalar_select %p46_p12, %s2413_s27, %s48_s20  }
  0x23   : > { %s1981_s30 = sshll.u32 %s423_s16, 3  ;;  %s1982_s25 = sshll.u32 %s2429_s14, 7 }
  0x24   : > { %2967 = sst [smem:[#allocation22_spill]] %s2600_s17  ;;  %s2968_s0 = sld [smem:[#allocation24_spill]] }
  0x25   : > { %s427_s19 = scalar_lea.vmem [#allocation4], %s1981_s30  ;;  %p2612_p0 = pnand %p2202_p13, %p2575_p3 }
  0x26   : > { %s434_s23 = sshll.u32 %s427_s19, 4  ;;  %s424_s13 = scalar_lea.sflag [#allocation5], %s423_s16  ;;  %s2608_s23 = int_to_ptr.vmem [resolvable:$true] %s434_s23 }
  0x27   : > { %p2307_p5 = pneg %p2612_p0 }
  0x2a   : > { %s2606_s12 = scalar_lea.hbm %s2968_s0, %s1982_s25  ;;  %s2310_s19 = scalar_lea.hbm %s2968_s0, 256 }
  0x2b   : > { %s2305_s25 = scalar_lea.hbm %s2606_s12, 128  ;;  %p2311_p3 = scmp.lt.u32.totalorder %s2606_s12, %s2968_s0 }
  0x2c   : > { %p2306_p4 = scmp.ne.s32.totalorder %s2606_s12, %s2305_s25  ;;  %p2312_p8 = scmp.lt.u32.totalorder %s2310_s19, %s2305_s25 }
  0x2d   : > { %p2314_p13 = scmp.lt.u32.totalorder %s2305_s25, %s2606_s12 }
  0x2e   : > { %p2308_p6 = pnand %p2307_p5, %p2306_p4  ;;  %p2313_p12 = por %p2312_p8, %p2311_p3 }
  0x30   : > { %p2309_p7 = pneg %p2308_p6  ;;  %p2315_p1 = por %p2314_p13, %p2313_p12 }
  0x32   : > { %p2316_p2 = pnand %p2315_p1, %p2309_p7 }
  0x34   : > { %2319 = shalt.err (!%p2316_p2)
}
  0x35   : > { %s2320_s16 = scalar_lea.vmem %s2608_s23, 128  ;;  %s2435_s29 = smov [#allocation4]  }
  0x36   : > { %p2321_p4 = scmp.ne.s32.totalorder %s2608_s23, %s2320_s16  ;;  %s2325_s30 = sshll.u32 %s2435_s29, 4  ;;  %s2326_s30 = int_to_ptr.vmem [resolvable:$false] %s2325_s30 }
  0x37   : > { %s2327_s20 = scalar_lea.vmem %s2326_s30, 256  ;;  %p2328_p10 = scmp.lt.s32.totalorder %s2608_s23, %s2326_s30 }
  0x38   : > { %p2323_p6 = pnand %p2321_p4, %p2307_p5  ;;  %p2329_p3 = scmp.lt.s32.totalorder %s2327_s20, %s2320_s16 }
  0x3a   : > { %p2324_p11 = pneg %p2323_p6  ;;  %p2330_p8 = por %p2329_p3, %p2328_p10 }
  0x3c   : > { %p2331_p12 = pnand %p2330_p8, %p2324_p11 }
  0x3e   : > { %2334 = shalt.err (!%p2331_p12)
}
  0x3f   : > { %2197 = dma.hbm_to_vmem [thread:$0]  (!%p2612_p0), %s2606_s12, 128, %s2608_s23, %s424_s13  }
  0x40   : > { %p2970_p1 = scmp.lt.s32.totalorder %s2433_s15, 5  ;;  %p2971_p2 = scmp.ge.s32.totalorder %s2433_s15, 1 }
  0x42   : > { %p520_p5 = pnand %p2971_p2, %p2970_p1 }
  0x44   : > { %523 = sbr.rel (%p520_p5) target bundleno = 2664 (0xa68), region = 72 }
  0x4b   : > { %s2648_s25 = sand.u32 1, %s2409_s26  }
  0x4c   : > { %2972 = sst [smem:[#allocation23_spill]] %s2648_s25  ;;  %s1984_s19 = sshll.u32 %s2648_s25, 3 }
  0x4d   : > { %s526_s21 = scalar_lea.sflag [#allocation5], %s2648_s25  ;;  %s529_s16 = scalar_lea.vmem [#allocation4], %s1984_s19 }
  0x4e   : > { %2396 = dma.done.wait (%p2583_p9), %s526_s21, 128  }
  0x4f   : > { %2398 = vsyncadd (%p2583_p9), %s526_s21, 4294967168  ;;  %p616_p10 = scmp.lt.s32.totalorder %s2417_s28, 1  ;;  %s2973_s1 = sld [smem:[#allocation25_spill]] }
  0x50   : > { %s2974_s3 = sld [smem:[#allocation26_spill]]  ;;  %s2975_s7 = sld [smem:[#allocation27_spill]] }
  0x51   : > { %s2658_s12 = scalar_select %p616_p10, %s2417_s28, 1 }
  0x52   : > { %s2976_s25 = sld [smem:[#allocation28_spill]]  ;;  %s2712_s0 = scalar_lea.vmem [#allocation7], %s1984_s19 }
  0x53   : > { %s2024_s23 = sshll.u32 %s2658_s12, 5  ;;  %s653_s28 = scalar_lea.vmem %s2926_s10, %s2658_s12 }
  0x54   : > { %s656_s22 = scalar_lea.vmem %s2927_s11, %s2658_s12  ;;  %s2977_s21 = sld [smem:[#allocation13_spill]] }
  0x55   : > { %s620_s20 = scalar_lea.vmem %s2973_s1, %s2024_s23  ;;  %s645_s1 = scalar_lea.vmem %s2924_s8, %s2658_s12 }
  0x56   : > { %s2671_s14 = scalar_lea.vmem %s2974_s3, %s2024_s23  ;;  %s2688_s30 = scalar_lea.vmem %s2975_s7, %s2024_s23 }
  0x57   : > { %s2027_s3 = sshll.u32 %s2658_s12, 6 }
  0x58   : > { %s2698_s26 = scalar_lea.vmem %s2925_s9, %s2027_s3  ;;  %s659_s7 = scalar_lea.vmem %s2976_s25, %s2658_s12 }
  0x5a   : > { %p1994_p9 = scmp.ne.s32.totalorder %s2977_s21, 0 }
  0x5b   : > { %v664_v0 = vld [vmem:[%s529_s16] sm:$0xff] (!%p1994_p9)  ;;  %vm665_vm0 = vcmask (!%p1994_p9), 261120  }
  0x5c   : > { %663 = sbr.rel (%p1994_p9) target bundleno = 99 (0x63), region = 80  ;;  %666 = vst.msk [vmem:[#allocation2] sm:$0xff] (!%p1994_p9), %vm665_vm0, %v664_v0 }
  0x63 PF: > { %v668_v1 = vld [vmem:[%s620_s20] sm:$0xff]  ;;  %v669_v2 = vld [vmem:[%s620_s20 + $0x8] sm:$0xff]  ;;  %v670_v3 = vld [vmem:[%s620_s20 + $0x10] sm:$0xff]  ;;  %v2436_v4 = vmov 0.0|0.0   ;;  %vm2437_vm1 = vmmov 0   ;;  %v2438_v7 = vmov 0.0   ;;  %s2978_s19 = scalar_lea.vmem %s2918_s2, %s2658_s12 }
  0x64   : > { %2160 = vmatprep.subr.bf16.mxu1 %v2436_v4  ;;  %v2161_v5 = vpack.c.bf16 %v669_v2, %v668_v1  ;;  %v671_v6 = vld [vmem:[%s620_s20 + $0x18] sm:$0xff]  ;;  %2076 = vmatprep.mubr.msk.f32.mxu1 %vm2437_vm1, %v2438_v7  ;;  %v2722_v9 = vld [vmem:[#allocation2] sm:$0xff]  ;;  %vm679_vm2 = vcmask 261120   ;;  %s2439_s16 = smov 120   ;;  %s2440_s20 = smov 96   ;;  %vm756_vm3 = vcmask 64512  }
  0x65   : > { %2089 = vmatprep.subr.mxu0 %v2438_v7  ;;  %2091 = vmatprep.mubr.msk.f32.mxu0 %vm2437_vm1, %v2438_v7  ;;  %v2164_v8 = vpack.c.bf16 %v671_v6, %v670_v3  ;;  %v1995_v10 = vld [vmem:[%s2978_s19] ss:$0 sm:$0xff]  ;;  %s2441_s13 = smov 80   ;;  %s2442_s27 = smov 88   ;;  %vm1090_vm4 = vcmask 130112   ;;  %vm1262_vm5 = vcmask 195712  }
  0x66   : > { %2162 = vmatpush3.bf16.msra.mxu1 %v2161_v5  ;;  %s2443_s17 = smov 72   ;;  %s2444_s15 = smov 112   ;;  %vm1434_vm6 = vcmask 261312   ;;  %vm1652_vm7 = vcmask 523264  }
  0x67   : > { %2163 = vmatprep.subr.bf16.mxu1 %v2436_v4  ;;  %s2445_s18 = smov 104   ;;  %s2446_s24 = smov 56  }
  0x68   : > { %s2447_s23 = smov 64   ;;  %s2448_s29 = smov 48  }
  0x69   : > { %s2449_s21 = smov 40   ;;  %s2450_s3 = smov 8  }
  0x6a   : > { %2165 = vmatpush3.bf16.msra.mxu1 %v2164_v8  ;;  %s2451_s25 = smov 16   ;;  %s2452_s19 = smov 24  }
  0x6b   : > { %2079 = vmatprep.subr.mxu1 %v2438_v7 }
  0x6d   : > { %2077 = vmatmul.mubr.msk.f32.vlgmr.msra.gmra.mrb[0].mxu1 %vm679_vm2, %v2722_v9 }
  0x6e   : > { %2081 = vmatprep.mubr.msk.f32.mxu1 %vm2437_vm1, %v2438_v7 }
 0x140   : > { %v749_v11 = vpop.f32.mrb[0].mxu1 }
 0x141   : > { %v2734_v12 = vadd.f32 %v1995_v10, %v749_v11  ;;  %v2078_v13 = vpop.f32.mrb[1].mxu1 }
 0x143   : > { %920 = vrot.lane.b32.xlu1 %v2734_v12, %s2439_s16  ;;  %754 = vrot.lane.b32.xlu0 %v2734_v12, %s2440_s20  ;;  %s2979_s20 = scalar_lea.vmem %s2920_s4, %s2658_s12 }
 0x147   : > { %1094 = vrot.lane.b32.xlu1 %v2734_v12, %s2441_s13  ;;  %922 = vrot.lane.b32.xlu0 %v2734_v12, %s2442_s27  ;;  %s2980_s27 = scalar_lea.vmem %s2921_s5, %s2658_s12 }
 0x14b   : > { %1266 = vrot.lane.b32.xlu1 %v2734_v12, %s2443_s17  ;;  %1092 = vrot.lane.b32.xlu0 %v2734_v12, %s2444_s15 }
 0x14f   : > { %1264 = vrot.lane.b32.xlu0 %v2734_v12, %s2445_s18  ;;  %s2981_s18 = scalar_lea.vmem %s2922_s6, %s2658_s12 }
 0x1b5   : > { %v921_v14 = vpop.permute.xlu1 %920  ;;  %v755_v15 = vpop.permute.xlu0 %754 }
 0x1b6   : > { %2080 = vmatpush3.xpose.msk.msra.mxu1 %vm756_vm3, %v755_v15 }
 0x1b7   : > { %2084 = vmatprep.subr.mxu1 %v2438_v7 }
 0x1b9   : > { %2082 = vmatmul.mubr.msk.f32.vlgmr.msra.gmra.mrb[2].mxu1 %vm756_vm3, %v2734_v12  ;;  %v923_v16 = vpop.permute.xlu0 %922  ;;  %v1095_v17 = vpop.permute.xlu1 %1094 }
 0x1ba   : > { %2090 = vmatpush3.xpose.msk.msra.mxu0 %vm756_vm3, %v923_v16  ;;  %2086 = vmatprep.mubr.msk.f32.mxu1 %vm2437_vm1, %v2438_v7  ;;  %v1437_v16 = vld [vmem:[%s2671_s14] sm:$0xff] }
 0x1bb   : > { %2099 = vmatprep.subr.mxu0 %v2438_v7 }
 0x1bd   : > { %2092 = vmatmul.mubr.msk.f32.vlgmr.msra.gmra.mrb[0].mxu0 %vm756_vm3, %v921_v14  ;;  %v1093_v18 = vpop.permute.xlu0 %1092  ;;  %v1267_v19 = vpop.permute.xlu1 %1266 }
 0x1be   : > { %2100 = vmatpush3.xpose.msk.msra.mxu0 %vm756_vm3, %v1095_v17  ;;  %2101 = vmatprep.mubr.msk.f32.mxu0 %vm2437_vm1, %v2438_v7  ;;  %v1438_v17 = vld [vmem:[%s2671_s14 + $0x8] sm:$0xff] }
 0x1bf   : > { %2109 = vmatprep.subr.mxu0 %v2438_v7 }
 0x1c1   : > { %2102 = vmatmul.mubr.msk.f32.vlgmr.msra.gmra.mrb[2].mxu0 %vm756_vm3, %v1093_v18  ;;  %v1265_v20 = vpop.permute.xlu0 %1264  ;;  %v2167_v18 = vpack.c.bf16 %v1438_v17, %v1437_v16 }
 0x1c2   : > { %2110 = vmatpush3.xpose.msk.msra.mxu0 %vm756_vm3, %v1267_v19  ;;  %2111 = vmatprep.mubr.msk.f32.mxu0 %vm2437_vm1, %v2438_v7  ;;  %v1439_v19 = vld [vmem:[%s2671_s14 + $0x10] sm:$0xff] }
 0x1c3   : > { %2166 = vmatprep.subr.bf16.mxu0 %v2436_v4 }
 0x1c5   : > { %2112 = vmatmul.mubr.msk.f32.vlgmr.msra.gmra.mrb[4].mxu0 %vm756_vm3, %v1265_v20  ;;  %v1440_v20 = vld [vmem:[%s2671_s14 + $0x18] sm:$0xff] }
 0x1c6   : > { %2127 = vmatprep.mubr.msk.f32.mxu0 %vm2437_vm1, %v2438_v7  ;;  %2168 = vmatpush3.bf16.msra.mxu0 %v2167_v18 }
 0x1c7   : > { %2169 = vmatprep.subr.bf16.mxu0 %v2436_v4 }
 0x28c   : > { %v827_v21 = vpop.f32.mrb[2].mxu1 }
 0x28d   : > { %v831_v22 = vmul.f32 0.35355338, %v827_v21  ;;  %v2083_v23 = vpop.f32.mrb[3].mxu1  ;;  %v2170_v21 = vpack.c.bf16 %v1440_v20, %v1439_v19 }
 0x28f   : > { %v832_v24 = vsel %vm756_vm3, %v831_v22, -inf  ;;  %2171 = vmatpush3.bf16.msra.mxu0 %v2170_v21 }
 0x290   : > { %v994_v25 = vpop.f32.mrb[0].mxu0  ;;  %833 = vmax.xlane.f32.xlu1 %v832_v24  ;;  %2178 = vmatprep.subr.bf16.mxu0 %v2436_v4 }
 0x291   : > { %v998_v26 = vmul.f32 0.35355338, %v994_v25  ;;  %v2093_v27 = vpop.f32.mrb[1].mxu0 }
 0x293   : > { %v999_v28 = vsel %vm756_vm3, %v998_v26, -inf }
 0x294   : > { %1000 = vmax.xlane.f32.xlu0 %v999_v28  ;;  %v1166_v29 = vpop.f32.mrb[2].mxu0 }
 0x295   : > { %v1170_v30 = vmul.f32 0.35355338, %v1166_v29  ;;  %v2103_v31 = vpop.f32.mrb[3].mxu0 }
 0x297   : > { %v1171_v32 = vsel %vm756_vm3, %v1170_v30, -inf }
 0x298   : > { %1172 = vmax.xlane.f32.xlu0 %v1171_v32  ;;  %v1338_v33 = vpop.f32.mrb[4].mxu0 }
 0x299   : > { %v1342_v34 = vmul.f32 0.35355338, %v1338_v33  ;;  %v2113_v35 = vpop.f32.mrb[5].mxu0 }
 0x29b   : > { %v1343_v36 = vsel %vm756_vm3, %v1342_v34, -inf }
 0x29c   : > { %1344 = vmax.xlane.f32.xlu1 %v1343_v36 }
 0x2ad   : > { %1010 = vrot.lane.b32.xlu1 %v2734_v12, %s2446_s24 }
 0x31d   : > { %v834_v37 = vpop.xlane.xlu1 %833 }
 0x31e   : > { %v835_v38 = vsub.f32 %v831_v22, %v834_v37 }
 0x320   : > { %v836_v39 = vmul.f32 1.442695, %v835_v38 }
 0x321   : > { %v1001_v40 = vpop.xlane.xlu0 %1000 }
 0x322   : > { %2285 = vpow2.f32 %v836_v39  ;;  %v1002_v41 = vsub.f32 %v998_v26, %v1001_v40  ;;  %v1552_v40 = vld [vmem:[%s2688_s30] sm:$0xff] }
 0x324   : > { %v1003_v42 = vmul.f32 1.442695, %v1002_v41  ;;  %v1553_v41 = vld [vmem:[%s2688_s30 + $0x8] sm:$0xff] }
 0x325   : > { %v1173_v52 = vpop.xlane.xlu0 %1172 }
 0x326   : > { %2287 = vpow2.f32 %v1003_v42  ;;  %v1174_v53 = vsub.f32 %v1170_v30, %v1173_v52  ;;  %v2009_v30 = vld [vmem:[%s2979_s20] ss:$0 sm:$0xff]  ;;  %v2173_v42 = vpack.c.bf16 %v1553_v41, %v1552_v40  ;;  %v1642_v52 = vld [vmem:[%s2698_s26 + $0x28] sm:$0xff] }
 0x328   : > { %v1175_v54 = vmul.f32 1.442695, %v1174_v53 }
 0x329   : > { %v1345_v43 = vpop.xlane.xlu1 %1344 }
 0x32a   : > { %v1346_v44 = vsub.f32 %v1342_v34, %v1345_v43  ;;  %v1555_v43 = vld [vmem:[%s2688_s30 + $0x18] sm:$0xff] }
 0x32c   : > { %v2286_v45 = vpop.eup %2285  ;;  %v1347_v46 = vmul.f32 1.442695, %v1346_v44 }
 0x32d   : > { %v838_v47 = vsel %vm756_vm3, %v2286_v45, 0.0  ;;  %v1011_v57 = vpop.permute.xlu1 %1010 }
 0x32e   : > { %2289 = vpow2.f32 %v1347_v46  ;;  %839 = vadd.xlane.f32.xlu0 %v838_v47  ;;  %v1638_v46 = vld [vmem:[%s2698_s26 + $0x8] sm:$0xff]  ;;  %v1639_v47 = vld [vmem:[%s2698_s26 + $0x10] sm:$0xff] }
 0x32f   : > { %2291 = vpow2.f32 %v1175_v54 }
 0x330   : > { %v2288_v48 = vpop.eup %2287 }
 0x331   : > { %v1005_v49 = vsel %vm756_vm3, %v2288_v48, 0.0 }
 0x332   : > { %1006 = vadd.xlane.f32.xlu1 %v1005_v49  ;;  %v1640_v49 = vld [vmem:[%s2698_s26 + $0x18] sm:$0xff] }
 0x338   : > { %v2290_v50 = vpop.eup %2289 }
 0x339   : > { %v1349_v51 = vsel %vm756_vm3, %v2290_v50, 0.0  ;;  %v2292_v55 = vpop.eup %2291 }
 0x33a   : > { %1350 = vadd.xlane.f32.xlu1 %v1349_v51  ;;  %v1177_v56 = vsel %vm756_vm3, %v2292_v55, 0.0  ;;  %v1641_v51 = vld [vmem:[%s2698_s26 + $0x20] sm:$0xff] }
 0x33b   : > { %v2185_v53 = vpack.c.bf16 %v1642_v52, %v1641_v51 }
 0x344   : > { %843 = vrot.lane.b32.xlu0 %v2734_v12, %s2447_s23 }
 0x34b   : > { %1182 = vrot.lane.b32.xlu1 %v2734_v12, %s2448_s29 }
 0x363   : > { %1178 = vadd.xlane.f32.xlu0 %v1177_v56 }
 0x379   : > { %1354 = vrot.lane.b32.xlu0 %v2734_v12, %s2449_s21 }
 0x3bb   : > { %v840_v58 = vpop.xlane.xlu0 %839 }
 0x3bc   : > { %2293 = vrcp.f32 %v840_v58  ;;  %v2011_v58 = vld [vmem:[%s2980_s27] ss:$0 sm:$0xff] }
 0x3bf   : > { %v844_v59 = vpop.permute.xlu0 %843  ;;  %v1007_v60 = vpop.xlane.xlu1 %1006 }
 0x3c0   : > { %2295 = vrcp.f32 %v1007_v60  ;;  %2085 = vmatpush3.msra.mxu1 %v844_v59  ;;  %v2012_v60 = vld [vmem:[%s2981_s18] ss:$0 sm:$0xff] }
 0x3c1   : > { %2094 = vmatprep.subr.mxu1 %v2438_v7 }
 0x3c6   : > { %v2294_v61 = vpop.eup %2293 }
 0x3c7   : > { %v842_v62 = vmul.f32 %v2294_v61, %v2286_v45  ;;  %v1351_v63 = vpop.xlane.xlu1 %1350  ;;  %v1637_v45 = vld [vmem:[%s2698_s26] sm:$0xff] }
 0x3c9   : > { %2087 = vmatmul.mubr.msk.f32.vlgmr.msra.gmra.mrb[4].mxu1 %vm756_vm3, %v842_v62  ;;  %v1643_v62 = vld [vmem:[%s2698_s26 + $0x30] sm:$0xff] }
 0x3ca   : > { %v2296_v0 = vpop.eup %2295  ;;  %2095 = vmatpush3.msra.mxu1 %v1011_v57  ;;  %2096 = vmatprep.mubr.msk.f32.mxu1 %vm2437_vm1, %v2438_v7 }
 0x3cb   : > { %v1009_v1 = vmul.f32 %v2296_v0, %v2288_v48  ;;  %v1183_v2 = vpop.permute.xlu1 %1182  ;;  %2104 = vmatprep.subr.mxu1 %v2438_v7  ;;  %v2179_v48 = vpack.c.bf16 %v1638_v46, %v1637_v45 }
 0x3cd   : > { %2097 = vmatmul.mubr.msk.f32.vlgmr.msra.gmra.mrb[6].mxu1 %vm756_vm3, %v1009_v1  ;;  %v2013_v1 = vld [vmem:[%s645_s1] ss:$0 sm:$0xff] }
 0x3ce   : > { %2105 = vmatpush3.msra.mxu1 %v1183_v2  ;;  %2106 = vmatprep.mubr.msk.f32.mxu1 %vm2437_vm1, %v2438_v7 }
 0x3cf   : > { %2114 = vmatprep.subr.mxu1 %v2438_v7 }
 0x3f0   : > { %v1179_v3 = vpop.xlane.xlu0 %1178 }
 0x3f1   : > { %2297 = vrcp.f32 %v1179_v3 }
 0x3f2   : > { %2299 = vrcp.f32 %v1351_v63  ;;  %v1644_v63 = vld [vmem:[%s2698_s26 + $0x38] sm:$0xff] }
 0x3f3   : > { %v2188_v0 = vpack.c.bf16 %v1644_v63, %v1643_v62 }
 0x3f4   : > { %v1355_v10 = vpop.permute.xlu0 %1354 }
 0x3fb   : > { %v2298_v5 = vpop.eup %2297 }
 0x3fc   : > { %v1181_v6 = vmul.f32 %v2298_v5, %v2292_v55  ;;  %v2300_v8 = vpop.eup %2299 }
 0x3fd   : > { %v1353_v11 = vmul.f32 %v2300_v8, %v2290_v50  ;;  %v2182_v50 = vpack.c.bf16 %v1640_v49, %v1639_v47  ;;  %v2015_v8 = vld [vmem:[%s653_s28] ss:$0 sm:$0xff] }
 0x3fe   : > { %2107 = vmatmul.mubr.msk.f32.vlgmr.msra.gmra.mrb[8].mxu1 %vm756_vm3, %v1181_v6 }
 0x3ff   : > { %2115 = vmatpush3.msra.mxu1 %v1355_v10  ;;  %2116 = vmatprep.mubr.msk.f32.mxu1 %vm2437_vm1, %v2438_v7 }
 0x400   : > { %2172 = vmatprep.subr.bf16.mxu1 %v2436_v4 }
 0x402   : > { %2117 = vmatmul.mubr.msk.f32.vlgmr.msra.gmra.mrb[10].mxu1 %vm756_vm3, %v1353_v11 }
 0x403   : > { %2138 = vmatprep.mubr.msk.f32.mxu1 %vm2437_vm1, %v2438_v7  ;;  %2174 = vmatpush3.bf16.msra.mxu1 %v2173_v42 }
 0x404   : > { %2175 = vmatprep.subr.bf16.mxu1 %v2436_v4 }
 0x49c   : > { %v915_v12 = vpop.f32.mrb[4].mxu1 }
 0x49d   : > { %919 = vst.msk [vmem:[#allocation3] sm:$0xff] %vm756_vm3, %v915_v12  ;;  %v2088_v13 = vpop.f32.mrb[5].mxu1 }
 0x4a0   : > { %v1082_v14 = vpop.f32.mrb[6].mxu1 }
 0x4a1   : > { %1087 = vrot.lane.b32.xlu1 %v1082_v14, %s2450_s3  ;;  %v2098_v15 = vpop.f32.mrb[7].mxu1 }
 0x4d1   : > { %v1254_v22 = vpop.f32.mrb[8].mxu1 }
 0x4d2   : > { %1259 = vrot.lane.b32.xlu0 %v1254_v22, %s2451_s25  ;;  %v2108_v23 = vpop.f32.mrb[9].mxu1 }
 0x4d5   : > { %v1426_v24 = vpop.f32.mrb[10].mxu1 }
 0x4d6   : > { %1431 = vrot.lane.b32.xlu1 %v1426_v24, %s2452_s19  ;;  %v2118_v25 = vpop.f32.mrb[11].mxu1  ;;  %v2017_v24 = vld [vmem:[%s656_s22] ss:$0 sm:$0xff]  ;;  %s2983_s19 = sld [smem:[#allocation13_spill]] }
 0x4dc   : > { %p2019_p11 = scmp.ne.s32.totalorder %s2983_s19, 1 }
 0x513   : > { %v1088_v26 = vpop.permute.xlu1 %1087 }
 0x514   : > { %1091 = vst.msk [vmem:[#allocation3] sm:$0xff] %vm1090_vm4, %v1088_v26  ;;  %v2018_v26 = vld [vmem:[%s659_s7] ss:$0 sm:$0xff] }
 0x544   : > { %v1260_v27 = vpop.permute.xlu0 %1259 }
 0x545   : > { %1263 = vst.msk [vmem:[#allocation3] sm:$0xff] %vm1262_vm5, %v1260_v27 }
 0x548   : > { %v1432_v28 = vpop.permute.xlu1 %1431 }
 0x549   : > { %1435 = vst.msk [vmem:[#allocation3] sm:$0xff] %vm1434_vm6, %v1432_v28 }
 0x550   : > { %v1436_v29 = vld [vmem:[#allocation3] sm:$0xff] }
 0x551   : > { %2128 = vmatmul.mubr.msk.f32.vlgmr.msra.gmra.mrb[6].mxu0 %vm679_vm2, %v1436_v29 }
 0x552   : > { %2157 = vmatprep.mubr.msk.f32.mxu0 %vm2437_vm1, %v2438_v7  ;;  %2180 = vmatpush3.bf16.msra.mxu0 %v2179_v48 }
 0x553   : > { %2181 = vmatprep.subr.bf16.mxu0 %v2436_v4 }
 0x556   : > { %2183 = vmatpush3.bf16.msra.mxu0 %v2182_v50 }
 0x557   : > { %2184 = vmatprep.subr.bf16.mxu0 %v2436_v4 }
 0x55a   : > { %2186 = vmatpush3.bf16.msra.mxu0 %v2185_v53 }
 0x55b   : > { %2187 = vmatprep.subr.bf16.mxu0 %v2436_v4 }
 0x55e   : > { %2189 = vmatpush3.bf16.msra.mxu0 %v2188_v0 }
 0x624   : > { %v1517_v31 = vpop.f32.mrb[6].mxu0 }
 0x625   : > { %v1518_v32 = vadd.f32 %v2009_v30, %v1517_v31  ;;  %v2129_v33 = vpop.f32.mrb[7].mxu0 }
 0x627   : > { %v1521_v34 = vadd.f32 %v1518_v32, %v2722_v9  ;;  %v1554_v9 = vld [vmem:[%s2688_s30 + $0x10] sm:$0xff] }
 0x628   : > { %v2176_v44 = vpack.c.bf16 %v1555_v43, %v1554_v9 }
 0x629   : > { %v1524_v35 = vsel %vm679_vm2, %v1521_v34, 0.0 }
 0x62a   : > { %1525 = vadd.xlane.f32.xlu0 %v1524_v35  ;;  %2177 = vmatpush3.bf16.msra.mxu1 %v2176_v44 }
 0x6b7   : > { %v1526_v36 = vpop.xlane.xlu0 %1525 }
 0x6b8   : > { %v1528_v37 = vmul.f32 0.03125, %v1526_v36 }
 0x6ba   : > { %v1529_v7 = vsub.f32 %v1521_v34, %v1528_v37 }
 0x6bc   : > { %v1530_v38 = vmul.f32 %v1529_v7, %v1529_v7 }
 0x6be   : > { %v1531_v39 = vsel %vm679_vm2, %v1530_v38, 0.0 }
 0x6bf   : > { %1532 = vadd.xlane.f32.xlu1 %v1531_v39 }
 0x74c   : > { %v1533_v54 = vpop.xlane.xlu1 %1532 }
 0x74d   : > { %v1534_v55 = vmul.f32 0.03125, %v1533_v54 }
 0x74f   : > { %v1535_v56 = vadd.f32 1e-05, %v1534_v55 }
 0x751   : > { %2301 = vrsqrt.f32 %v1535_v56 }
 0x75b   : > { %v2302_v57 = vpop.eup %2301 }
 0x75c   : > { %v1537_v59 = vmul.f32 %v2302_v57, %v1529_v7 }
 0x75e   : > { %v1544_v61 = vmul.f32 %v2011_v58, %v1537_v59 }
 0x760   : > { %v1551_v4 = vadd.f32 %v2012_v60, %v1544_v61 }
 0x762   : > { %2139 = vmatmul.mubr.msk.f32.vlgmr.msra.gmra.mrb[12].mxu1 %vm679_vm2, %v1551_v4 }
 0x835   : > { %v1632_v2 = vpop.f32.mrb[12].mxu1 }
 0x836   : > { %v1633_v3 = vadd.f32 %v2013_v1, %v1632_v2  ;;  %v2140_v5 = vpop.f32.mrb[13].mxu1 }
 0x838   : > { %v1636_v6 = vmax.f32 %v1633_v3, 0.0 }
 0x83a   : > { %2158 = vmatmul.mubr.msk.f32.vlgmr.msra.gmra.mrb[8].mxu0 %vm1652_vm7, %v1636_v6 }
 0x90d   : > { %v1722_v10 = vpop.f32.mrb[8].mxu0 }
 0x90e   : > { %v1723_v11 = vadd.f32 %v2015_v8, %v1722_v10  ;;  %v2159_v12 = vpop.f32.mrb[9].mxu0 }
 0x910   : > { %v1726_v13 = vadd.f32 %v1723_v11, %v1551_v4 }
 0x912   : > { %v1729_v14 = vsel %vm679_vm2, %v1726_v13, 0.0 }
 0x913   : > { %1730 = vadd.xlane.f32.xlu0 %v1729_v14 }
 0x9a0   : > { %v1731_v15 = vpop.xlane.xlu0 %1730 }
 0x9a1   : > { %v1732_v16 = vmul.f32 0.03125, %v1731_v15 }
 0x9a3   : > { %v1733_v17 = vsub.f32 %v1726_v13, %v1732_v16 }
 0x9a5   : > { %v1734_v18 = vmul.f32 %v1733_v17, %v1733_v17 }
 0x9a7   : > { %v1735_v19 = vsel %vm679_vm2, %v1734_v18, 0.0 }
 0x9a8   : > { %1736 = vadd.xlane.f32.xlu0 %v1735_v19 }
 0xa35   : > { %v1737_v20 = vpop.xlane.xlu0 %1736 }
 0xa36   : > { %v1738_v21 = vmul.f32 0.03125, %v1737_v20 }
 0xa38   : > { %v1739_v22 = vadd.f32 1e-05, %v1738_v21 }
 0xa3a   : > { %2303 = vrsqrt.f32 %v1739_v22 }
 0xa44   : > { %v2304_v23 = vpop.eup %2303 }
 0xa45   : > { %v1741_v25 = vmul.f32 %v2304_v23, %v1733_v17  ;;  %1760 = sbr.rel (%p2019_p11) target bundleno = 2636 (0xa4c), region = 84 }
 0xa47   : > { %v1748_v27 = vmul.f32 %v2017_v24, %v1741_v25 }
 0xa49   : > { %v1755_v28 = vadd.f32 %v2018_v26, %v1748_v27 }
 0xa4b   : > { %1756 = vst.msk [vmem:[#allocation2] sm:$0xff] %vm679_vm2, %v1755_v28  ;;  %1761 = vst.msk [vmem:[%s2712_s0] sm:$0xff] (!%p2019_p11), %vm679_vm2, %v1755_v28 }
 0xa4c PF: > { %s2984_s14 = sld [smem:[#allocation14_spill]]  ;;  %s2985_s22 = sld [smem:[#allocation23_spill]] }
 0xa4d   : > { %s2986_s16 = sld [smem:[#allocation20_spill]]  ;;  %s2987_s12 = sld [smem:[#allocation29_spill]] }
 0xa4e   : > { %s1776_s27 = sshll.u32 %s2712_s0, 4  ;;  %s2453_s18 = smov [#allocation7]   ;;  %s1777_s27 = int_to_ptr.vmem [resolvable:$true] %s1776_s27 }
 0xa4f   : > { %s2335_s15 = scalar_lea.vmem %s1777_s27, 128  ;;  %s2339_s24 = sshll.u32 %s2453_s18, 4  ;;  %s2340_s24 = int_to_ptr.vmem [resolvable:$false] %s2339_s24 }
 0xa50   : > { %p2336_p0 = scmp.ne.s32.totalorder %s1777_s27, %s2335_s15  ;;  %s2341_s23 = scalar_lea.vmem %s2340_s24, 256 }
 0xa51   : > { %p2342_p6 = scmp.lt.s32.totalorder %s1777_s27, %s2340_s24  ;;  %p2343_p3 = scmp.lt.s32.totalorder %s2341_s23, %s2335_s15 }
 0xa52   : > { %s2021_s20 = sshll.u32 %s2984_s14, 7  ;;  %s1763_s17 = scalar_lea.sflag [#allocation6], %s2985_s22 }
 0xa53   : > { %s2867_s7 = scalar_lea.hbm %s2987_s12, %s2021_s20  ;;  %p2988_p7 = scmp.ne.s32.totalorder %s2986_s16, 0 }
 0xa54   : > { %p2344_p8 = por %p2343_p3, %p2342_p6 }
 0xa55   : > { %p2337_p13 = pnand %p2336_p0, %p2988_p7 }
 0xa57   : > { %p2338_p4 = pneg %p2337_p13 }
 0xa59   : > { %p2345_p12 = pnand %p2344_p8, %p2338_p4 }
 0xa5b   : > { %2348 = shalt.err (!%p2345_p12)
}
 0xa5c   : > { %s2349_s0 = scalar_lea.hbm %s2867_s7, 128  ;;  %s2353_s1 = scalar_lea.hbm %s2987_s12, 256 }
 0xa5d   : > { %p2350_p1 = scmp.ne.s32.totalorder %s2867_s7, %s2349_s0  ;;  %p2354_p10 = scmp.lt.u32.totalorder %s2867_s7, %s2987_s12 }
 0xa5e   : > { %p2355_p9 = scmp.lt.u32.totalorder %s2353_s1, %s2349_s0  ;;  %p2357_p0 = scmp.lt.u32.totalorder %s2349_s0, %s2867_s7 }
 0xa5f   : > { %p2351_p2 = pnand %p2350_p1, %p2988_p7 }
 0xa60   : > { %p2356_p11 = por %p2355_p9, %p2354_p10 }
 0xa61   : > { %p2352_p5 = pneg %p2351_p2 }
 0xa62   : > { %p2358_p13 = por %p2357_p0, %p2356_p11 }
 0xa64   : > { %p2359_p4 = pnand %p2358_p13, %p2352_p5 }
 0xa66   : > { %2362 = shalt.err (!%p2359_p4)
}
 0xa67   : > { %2192 = dma.vmem_to_hbm [thread:$0]  (%p2988_p7), %s1777_s27, 128, %s2867_s7, %s1763_s17  }
 0xa68 PF: > { %s2989_s3 = sld [smem:[#allocation17_spill]]  ;;  %s2990_s25 = sld [smem:[#allocation10_spill]] }
 0xa69   : > { %s2991_s19 = sld [smem:[#allocation21_spill]] }
 0xa6e   : > { %p2203_p6 = scmp.ge.s32.totalorder %s2989_s3, 2  ;;  %s1788_s14 = sand.u32 1, %s2990_s25  }
 0xa6f   : > { %p2992_p3 = scmp.ne.s32.totalorder %s2991_s19, 0  ;;  %s1789_s22 = scalar_lea.sflag [#allocation6], %s1788_s14 }
 0xa71   : > { %p2199_p8 = pnand %p2203_p6, %p2992_p3 }
 0xa73   : > { %2400 = dma.done.wait (!%p2199_p8), %s1789_s22, 128  }
 0xa74   : > { %2402 = vsyncadd (!%p2199_p8), %s1789_s22, 4294967168  ;;  %s29_s15 = sadd.s32 1, %s2989_s3   ;;  %s2993_s25 = sld [smem:[#allocation11_spill]] }
 0xa75   : > { %p26_p12 = scmp.ge.s32.totalorder %s29_s15, 6   ;;  %s2994_s26 = sld [smem:[#allocation12_spill]] }
 0xa76   : > { %s2995_s27 = sld [smem:[#allocation22_spill]]  ;;  %s2996_s28 = sld [smem:[#allocation15_spill]] }
 0xa77   : > { %s2997_s29 = sld [smem:[#allocation16_spill]]  ;;  %s2998_s30 = sld [smem:[#allocation18_spill]] }
 0xa78   : > { %s2999_s14 = sld [smem:[#allocation19_spill]]  ;;  %28 = sbr.rel (!%p26_p12) target bundleno = 14 (0xe), region = 161 }
 0xa7f   :  { %1794 = vsyncpa [#allocation5], 1 }
 0xa80   :  { %1796 = vsyncpa [#allocation5 + $0x1], 1 }
 0xa81   :  { %1797 = vsyncpa [#allocation6], 1 }
 0xa82   :  { %1799 = vsyncpa [#allocation6 + $0x1], 1 }

</bundles_post_ra>
